<compile_context>
chip_gen: v6e
topology: v6e:2x2x1
jax: 0.10.0
libtpu: 0.0.40
codegen_flags: <defaults>
</compile_context>

<pallas_src>
import functools
import math

import jax
import jax.numpy as jnp
import numpy as np
from jax.experimental import pallas as pl
from jax.experimental.pallas import tpu as pltpu


def _round_up(x, m):
    return (x + m - 1) // m * m


# Packed gate-slot -> torch gate index (torch order is i, f, g, o).
# Packed order is i, f, o, g so sigmoid covers one contiguous 3*hp slab.
_PACK_ORDER = (0, 1, 3, 2)


# ---------------------------------------------------------------------------
# Pallas kernel: one LSTM layer.
# grid = (batch_blocks [parallel], time_blocks [arbitrary, sequential])
# ---------------------------------------------------------------------------
def _lstm_block_kernel(xp_ref, whh_ref, out_ref, h_scr, c_scr, *,
                       tb, bb, hp, seq_out):
    """xp_ref : (tb, bb, 4*hp) f32   precomputed x @ W_ih + b for this block
       whh_ref: (hp, 4*hp)           recurrent weights (f32 or bf16)
       out_ref: (tb, bb, hp) if seq_out else (bb, hp)
       h_scr/c_scr: (bb, hp) f32     recurrent state carried across time blocks
    """
    t_blk = pl.program_id(1)

    @pl.when(t_blk == 0)
    def _init():
        h_scr[...] = jnp.zeros_like(h_scr)
        c_scr[...] = jnp.zeros_like(c_scr)

    w_hh = whh_ref[...]
    h = h_scr[...]                     # f32 (bb, hp)
    c = c_scr[...]                     # f32 (bb, hp)

    # Fully unrolled static inner time loop; all slice offsets are multiples
    # of 8 (sublanes) / 128 (lanes), so loads/stores are unmasked.
    for s in range(tb):
        gates = xp_ref[s] + jnp.dot(
            h.astype(w_hh.dtype), w_hh, preferred_element_type=jnp.float32)
        # Packed gate order (i, f, o, g): one sigmoid slab + one tanh slab.
        sig = jax.nn.sigmoid(gates[:, :3 * hp])
        g = jnp.tanh(gates[:, 3 * hp:])
        i = sig[:, 0 * hp:1 * hp]
        f = sig[:, 1 * hp:2 * hp]
        o = sig[:, 2 * hp:3 * hp]
        c = f * c + i * g
        h = o * jnp.tanh(c)
        if seq_out:
            out_ref[s] = h.astype(out_ref.dtype)

    if not seq_out:
        # Last-hidden-only variant: output block index is constant over the
        # time axis, so it stays resident in VMEM and is written back once.
        out_ref[...] = h.astype(out_ref.dtype)

    h_scr[...] = h
    c_scr[...] = c


def lstm_layer(x_seq, w_ih_t, w_hh_t, b, *, tb, bb, hp, seq_out, seq_dtype):
    """One LSTM layer on time-major input x_seq of shape (T, bp, Dl).

    Returns the (T, bp, hp) hidden sequence if seq_out, else the (bp, hp)
    last hidden state (f32).
    """
    T, bp, dl = x_seq.shape
    nt = T // tb
    nb = bp // bb

    # Hoisted input projection: one large MXU matmul, completely off the
    # sequential critical path of the recurrence kernel. f32 accumulation.
    xp = (jnp.dot(x_seq.reshape(T * bp, dl), w_ih_t,
                  preferred_element_type=jnp.float32) + b
          ).reshape(T, bp, 4 * hp)

    kernel = functools.partial(_lstm_block_kernel, tb=tb, bb=bb, hp=hp,
                               seq_out=seq_out)
    if seq_out:
        out_shape = jax.ShapeDtypeStruct((T, bp, hp), seq_dtype)
        out_spec = pl.BlockSpec((tb, bb, hp), lambda bi, ti: (ti, bi, 0))
    else:
        out_shape = jax.ShapeDtypeStruct((bp, hp), jnp.float32)
        out_spec = pl.BlockSpec((bb, hp), lambda bi, ti: (bi, 0))

    return pl.pallas_call(
        kernel,
        out_shape=out_shape,
        grid_spec=pltpu.PrefetchScalarGridSpec(
            num_scalar_prefetch=0,
            grid=(nb, nt),
            in_specs=[
                pl.BlockSpec((tb, bb, 4 * hp), lambda bi, ti: (ti, bi, 0)),
                pl.BlockSpec((hp, 4 * hp), lambda bi, ti: (0, 0)),
            ],
            out_specs=out_spec,
            scratch_shapes=[pltpu.VMEM((bb, hp), jnp.float32),
                            pltpu.VMEM((bb, hp), jnp.float32)],
        ),
        compiler_params=pltpu.CompilerParams(
            # batch blocks are independent (megacore-shardable);
            # time blocks carry the recurrence -> sequential.
            dimension_semantics=("parallel", "arbitrary")),
    )(xp, w_hh_t)


# ---------------------------------------------------------------------------
# Model wrapper (glue in plain JAX)
# ---------------------------------------------------------------------------
def lstm_model_forward(x, params, *, time_block=8, batch_block=64):
    """Mirrors LSTM.forward in eval mode. x: (B,T,D) or (T,D) -> (proba, log_var)."""
    if x.ndim == 2:
        x = x[None]                                     # unsqueeze(0)
    B, T, _ = x.shape
    H, hp = params["H"], params["hp"]
    mxu_dtype = params["mxu_dtype"]
    bp = _round_up(max(B, 8), 8)                        # sublane-aligned batch

    # Largest time block <= time_block that divides T.
    tb = max(d for d in range(1, min(T, time_block) + 1) if T % d == 0)
    # Largest batch block (multiple of 8) <= batch_block that divides bp.
    bb = max(d for d in range(8, min(bp, _round_up(batch_block, 8)) + 1, 8)
             if bp % d == 0)

    xt = jnp.transpose(x, (1, 0, 2))                    # (T, B, D) time-major
    xt = jnp.pad(xt, ((0, 0), (0, bp - B), (0, 0)))     # zero-pad batch
    h_seq = xt.astype(mxu_dtype)                        # (T, bp, D)

    n_layers = len(params["lstm"])
    for li, layer in enumerate(params["lstm"]):
        last = li == n_layers - 1
        h_seq = lstm_layer(h_seq, layer["w_ih_t"], layer["w_hh_t"], layer["b"],
                           tb=tb, bb=bb, hp=hp, seq_out=not last,
                           seq_dtype=mxu_dtype)

    last_hidden = h_seq[:B, :H].astype(jnp.float32)     # == hidden[-1]  (B, H)
    # Tiny (B,H)@(H,2) heads in plain JAX (a pallas_call is pure overhead here).
    z = last_hidden @ params["w_heads"] + params["b_heads"]
    proba = jax.nn.sigmoid(z[:, 0])                     # sigmoid(fc(.)).squeeze(-1)
    log_var = z[:, 1]                                   # fc_log_var(.).squeeze(-1)
    return proba, log_var


# ---------------------------------------------------------------------------
# Parameter init / packing
# ---------------------------------------------------------------------------
def _pack_gates_t(w, in_dim_p, hp, dtype):
    """(4H, in_dim) torch-layout weight -> transposed, gate-padded (in_dim_p, 4*hp)
    with packed gate order i, f, o, g."""
    four_h, in_dim = w.shape
    h = four_h // 4
    out = jnp.zeros((in_dim_p, 4 * hp), jnp.float32)
    for slot, k in enumerate(_PACK_ORDER):
        out = out.at[:in_dim, slot * hp:slot * hp + h].set(w[k * h:(k + 1) * h, :].T)
    return out.astype(dtype)


def _pack_bias(b_ih, b_hh, hp):
    four_h = b_ih.shape[0]
    h = four_h // 4
    bsum = b_ih + b_hh
    out = jnp.zeros((1, 4 * hp), jnp.float32)
    for slot, k in enumerate(_PACK_ORDER):
        out = out.at[0, slot * hp:slot * hp + h].set(bsum[k * h:(k + 1) * h])
    return out


def init_params(key, input_size, hidden_size, num_layers, mxu_dtype=jnp.float32):
    hp = _round_up(hidden_size, 128)                    # lane-aligned hidden dim
    k = 1.0 / np.sqrt(hidden_size)
    layers = []
    for l in range(num_layers):
        din = input_size if l == 0 else hidden_size
        din_p = input_size if l == 0 else hp            # layers>0 consume padded h
        key, k0, k1, k2, k3 = jax.random.split(key, 5)
        w_ih = jax.random.uniform(k0, (4 * hidden_size, din), jnp.float32, -k, k)
        w_hh = jax.random.uniform(k1, (4 * hidden_size, hidden_size), jnp.float32, -k, k)
        b_ih = jax.random.uniform(k2, (4 * hidden_size,), jnp.float32, -k, k)
        b_hh = jax.random.uniform(k3, (4 * hidden_size,), jnp.float32, -k, k)
        layers.append({
            "w_ih_t": _pack_gates_t(w_ih, din_p, hp, mxu_dtype),
            "w_hh_t": _pack_gates_t(w_hh, hp, hp, mxu_dtype),
            "b": _pack_bias(b_ih, b_hh, hp),
            "raw": (w_ih, w_hh, b_ih, b_hh),            # for the pure-JAX reference
        })
    key, k0, k1, k2, k3 = jax.random.split(key, 5)
    w_fc = jax.random.uniform(k0, (1, hidden_size), jnp.float32, -k, k)
    b_fc = jax.random.uniform(k1, (1,), jnp.float32, -k, k)
    w_lv = jax.random.uniform(k2, (1, hidden_size), jnp.float32, -k, k)
    b_lv = jax.random.uniform(k3, (1,), jnp.float32, -k, k)
    return {
        "lstm": layers,
        "w_heads": jnp.concatenate([w_fc.T, w_lv.T], axis=1),   # (H, 2)
        "b_heads": jnp.concatenate([b_fc, b_lv]),               # (2,)
        "H": hidden_size,
        "hp": hp,
        "mxu_dtype": mxu_dtype,
    }


# Pure-JAX f32 reference (standard torch.nn.LSTM formulation; correctness only)
def lstm_model_ref(x, params):
    if x.ndim == 2:
        x = x[None]
    B = x.shape[0]
    H = params["H"]
    h_seq = jnp.transpose(x, (1, 0, 2))
    for layer in params["lstm"]:
        w_ih, w_hh, b_ih, b_hh = layer["raw"]
        wih_t, whh_t, b = w_ih.T, w_hh.T, (b_ih + b_hh)[None, :]

        def step(carry, x_t, wih_t=wih_t, whh_t=whh_t, b=b):
            h, c = carry
            gates = x_t @ wih_t + h @ whh_t + b
            i = jax.nn.sigmoid(gates[:, :H])
            f = jax.nn.sigmoid(gates[:, H:2 * H])
            g = jnp.tanh(gates[:, 2 * H:3 * H])
            o = jax.nn.sigmoid(gates[:, 3 * H:])
            c = f * c + i * g
            h = o * jnp.tanh(c)
            return (h, c), h

        init = (jnp.zeros((B, H), jnp.float32), jnp.zeros((B, H), jnp.float32))
        _, h_seq = jax.lax.scan(step, init, h_seq)
    last_h = h_seq[-1]
    z = last_h @ params["w_heads"] + params["b_heads"]
    return jax.nn.sigmoid(z[:, 0]), z[:, 1]


if __name__ == "__main__":
    batch, seq, input_size, hidden_size, num_layers = 2, 8, 16, 32, 2

    key = jax.random.PRNGKey(0)
    key, kx, kx2, kp = jax.random.split(key, 4)
    x = jax.random.normal(kx, (batch, seq, input_size), jnp.float32)

    # --- f32 matmul operands: strict check (also exercises multi-time-block grid) ---
    params_f32 = init_params(kp, input_size, hidden_size, num_layers,
                             mxu_dtype=jnp.float32)
    proba, log_var = jax.block_until_ready(
        lstm_model_forward(x, params_f32, time_block=4))

    proba_ref, log_var_ref = lstm_model_ref(x, params_f32)
    np.testing.assert_allclose(np.asarray(proba), np.asarray(proba_ref),
                               rtol=1e-5, atol=1e-5)
    np.testing.assert_allclose(np.asarray(log_var), np.asarray(log_var_ref),
                               rtol=1e-5, atol=1e-5)

    # --- bf16 matmul operands (v6e/v7x MXU fast path), f32 gate math ---
    params_bf16 = init_params(kp, input_size, hidden_size, num_layers,
                              mxu_dtype=jnp.bfloat16)
    proba16, log_var16 = jax.block_until_ready(
        lstm_model_forward(x, params_bf16, time_block=8))
    np.testing.assert_allclose(np.asarray(proba16), np.asarray(proba_ref),
                               rtol=0, atol=5e-2)
    np.testing.assert_allclose(np.asarray(log_var16), np.asarray(log_var_ref),
                               rtol=0, atol=5e-2)

    # --- larger batch: exercises the parallel batch-block grid axis (nb > 1) ---
    x_big = jax.random.normal(kx2, (16, seq, input_size), jnp.float32)
    proba_b, log_var_b = jax.block_until_ready(
        lstm_model_forward(x_big, params_f32, time_block=8, batch_block=8))
    proba_b_ref, log_var_b_ref = lstm_model_ref(x_big, params_f32)
    np.testing.assert_allclose(np.asarray(proba_b), np.asarray(proba_b_ref),
                               rtol=1e-5, atol=1e-5)
    np.testing.assert_allclose(np.asarray(log_var_b), np.asarray(log_var_b_ref),
                               rtol=1e-5, atol=1e-5)

    print("KERNEL_OK")
</pallas_src>

<mosaic_0001>
module attributes {stable_mosaic.version = 11 : i64} {
  func.func @_lstm_block_kernel(%arg0: i32, %arg1: i32, %arg2: memref<4x8x512xf32, #tpu.memory_space<vmem>>, %arg3: memref<128x512xf32, #tpu.memory_space<vmem>>, %arg4: memref<4x8x128xf32, #tpu.memory_space<vmem>>, %arg5: memref<8x128xf32, #tpu.memory_space<vmem>>, %arg6: memref<8x128xf32, #tpu.memory_space<vmem>>) attributes {dimension_semantics = [#tpu.dimension_semantics<parallel>, #tpu.dimension_semantics<arbitrary>], iteration_bounds = array<i64: 1, 2>, scalar_prefetch = 0 : i64, scratch_operands = 2 : i64, tpu.core_type = #tpu.core_type<tc>, window_params = [{transform_indices = @transform_0, window_bounds = array<i64: 4, 8, 512>}, {pipeline_mode = #tpu.pipeline_mode<synchronous>, transform_indices = @transform_1, window_bounds = array<i64: 128, 512>}, {transform_indices = @transform_2, window_bounds = array<i64: 4, 8, 128>}]} {
    %c0_i32 = arith.constant 0 : i32
    %0 = arith.cmpi eq, %arg1, %c0_i32 : i32
    %1 = arith.extui %0 : i1 to i32
    %c0_i32_0 = arith.constant 0 : i32
    %2 = arith.cmpi ne, %1, %c0_i32_0 : i32
    scf.if %2 {
      %cst_38 = arith.constant 0.000000e+00 : f32
      %100 = vector.broadcast %cst_38 : f32 to vector<8x128xf32>
      %c0_39 = arith.constant 0 : index
      %c0_40 = arith.constant 0 : index
      %101 = vector.load %arg5[%c0_39, %c0_40] : memref<8x128xf32, #tpu.memory_space<vmem>>, vector<8x128xf32>
      tpu.vector_store %arg5[%c0_39, %c0_40], %100 {strides = array<i32>} : memref<8x128xf32, #tpu.memory_space<vmem>>, vector<8x128xf32>,
      %cst_41 = arith.constant 0.000000e+00 : f32
      %102 = vector.broadcast %cst_41 : f32 to vector<8x128xf32>
      %c0_42 = arith.constant 0 : index
      %c0_43 = arith.constant 0 : index
      %103 = vector.load %arg6[%c0_42, %c0_43] : memref<8x128xf32, #tpu.memory_space<vmem>>, vector<8x128xf32>
      tpu.vector_store %arg6[%c0_42, %c0_43], %102 {strides = array<i32>} : memref<8x128xf32, #tpu.memory_space<vmem>>, vector<8x128xf32>,
    } else {
    }
    %c0 = arith.constant 0 : index
    %c0_1 = arith.constant 0 : index
    %3 = vector.load %arg3[%c0, %c0_1] : memref<128x512xf32, #tpu.memory_space<vmem>>, vector<128x512xf32>
    %c0_2 = arith.constant 0 : index
    %c0_3 = arith.constant 0 : index
    %4 = vector.load %arg5[%c0_2, %c0_3] : memref<8x128xf32, #tpu.memory_space<vmem>>, vector<8x128xf32>
    %c0_4 = arith.constant 0 : index
    %c0_5 = arith.constant 0 : index
    %5 = vector.load %arg6[%c0_4, %c0_5] : memref<8x128xf32, #tpu.memory_space<vmem>>, vector<8x128xf32>
    %c0_6 = arith.constant 0 : index
    %c0_7 = arith.constant 0 : index
    %c0_8 = arith.constant 0 : index
    %6 = vector.load %arg2[%c0_6, %c0_7, %c0_8] : memref<4x8x512xf32, #tpu.memory_space<vmem>>, vector<1x8x512xf32>
    %7 = vector.shape_cast %6 : vector<1x8x512xf32> to vector<8x512xf32>
    %cst = arith.constant dense<0.000000e+00> : vector<8x512xf32>
    %8 = tpu.matmul %4, %3, %cst {dimension_numbers = #tpu.dot_dimension_numbers<[1], [0], [0], [1], [0, 0, 1, 1], [], []>} : vector<8x128xf32>, vector<128x512xf32>, vector<8x512xf32> -> vector<8x512xf32>
    %9 = arith.addf %7, %8 : vector<8x512xf32>
    %10 = vector.extract_strided_slice %9 {offsets = [0, 0], sizes = [8, 384], strides = [1, 1]} : vector<8x512xf32> to vector<8x384xf32>
    %11 = arith.negf %10 : vector<8x384xf32>
    %12 = math.exp %11 : vector<8x384xf32>
    %cst_9 = arith.constant 1.000000e+00 : f32
    %13 = vector.broadcast %cst_9 : f32 to vector<8x384xf32>
    %14 = arith.addf %13, %12 : vector<8x384xf32>
    %15 = arith.divf %13, %14 : vector<8x384xf32>
    %16 = vector.extract_strided_slice %9 {offsets = [0, 384], sizes = [8, 128], strides = [1, 1]} : vector<8x512xf32> to vector<8x128xf32>
    %17 = math.tanh %16 : vector<8x128xf32>
    %18 = vector.extract_strided_slice %15 {offsets = [0, 0], sizes = [8, 128], strides = [1, 1]} : vector<8x384xf32> to vector<8x128xf32>
    %19 = vector.extract_strided_slice %15 {offsets = [0, 128], sizes = [8, 128], strides = [1, 1]} : vector<8x384xf32> to vector<8x128xf32>
    %20 = vector.extract_strided_slice %15 {offsets = [0, 256], sizes = [8, 128], strides = [1, 1]} : vector<8x384xf32> to vector<8x128xf32>
    %21 = arith.mulf %19, %5 : vector<8x128xf32>
    %22 = arith.mulf %18, %17 : vector<8x128xf32>
    %23 = arith.addf %21, %22 : vector<8x128xf32>
    %24 = math.tanh %23 : vector<8x128xf32>
    %25 = arith.mulf %20, %24 : vector<8x128xf32>
    %c0_10 = arith.constant 0 : index
    %c0_11 = arith.constant 0 : index
    %c0_12 = arith.constant 0 : index
    %26 = vector.load %arg4[%c0_10, %c0_11, %c0_12] : memref<4x8x128xf32, #tpu.memory_space<vmem>>, vector<1x8x128xf32>
    %27 = vector.shape_cast %26 : vector<1x8x128xf32> to vector<8x128xf32>
    %28 = vector.shape_cast %25 : vector<8x128xf32> to vector<1x8x128xf32>
    tpu.vector_store %arg4[%c0_10, %c0_11, %c0_12], %28 {strides = array<i32>} : memref<4x8x128xf32, #tpu.memory_space<vmem>>, vector<1x8x128xf32>,
    %c1 = arith.constant 1 : index
    %c0_13 = arith.constant 0 : index
    %c0_14 = arith.constant 0 : index
    %29 = vector.load %arg2[%c1, %c0_13, %c0_14] : memref<4x8x512xf32, #tpu.memory_space<vmem>>, vector<1x8x512xf32>
    %30 = vector.shape_cast %29 : vector<1x8x512xf32> to vector<8x512xf32>
    %cst_15 = arith.constant dense<0.000000e+00> : vector<8x512xf32>
    %31 = tpu.matmul %25, %3, %cst_15 {dimension_numbers = #tpu.dot_dimension_numbers<[1], [0], [0], [1], [0, 0, 1, 1], [], []>} : vector<8x128xf32>, vector<128x512xf32>, vector<8x512xf32> -> vector<8x512xf32>
    %32 = arith.addf %30, %31 : vector<8x512xf32>
    %33 = vector.extract_strided_slice %32 {offsets = [0, 0], sizes = [8, 384], strides = [1, 1]} : vector<8x512xf32> to vector<8x384xf32>
    %34 = arith.negf %33 : vector<8x384xf32>
    %35 = math.exp %34 : vector<8x384xf32>
    %cst_16 = arith.constant 1.000000e+00 : f32
    %36 = vector.broadcast %cst_16 : f32 to vector<8x384xf32>
    %37 = arith.addf %36, %35 : vector<8x384xf32>
    %38 = arith.divf %36, %37 : vector<8x384xf32>
    %39 = vector.extract_strided_slice %32 {offsets = [0, 384], sizes = [8, 128], strides = [1, 1]} : vector<8x512xf32> to vector<8x128xf32>
    %40 = math.tanh %39 : vector<8x128xf32>
    %41 = vector.extract_strided_slice %38 {offsets = [0, 0], sizes = [8, 128], strides = [1, 1]} : vector<8x384xf32> to vector<8x128xf32>
    %42 = vector.extract_strided_slice %38 {offsets = [0, 128], sizes = [8, 128], strides = [1, 1]} : vector<8x384xf32> to vector<8x128xf32>
    %43 = vector.extract_strided_slice %38 {offsets = [0, 256], sizes = [8, 128], strides = [1, 1]} : vector<8x384xf32> to vector<8x128xf32>
    %44 = arith.mulf %42, %23 : vector<8x128xf32>
    %45 = arith.mulf %41, %40 : vector<8x128xf32>
    %46 = arith.addf %44, %45 : vector<8x128xf32>
    %47 = math.tanh %46 : vector<8x128xf32>
    %48 = arith.mulf %43, %47 : vector<8x128xf32>
    %c1_17 = arith.constant 1 : index
    %c0_18 = arith.constant 0 : index
    %c0_19 = arith.constant 0 : index
    %49 = vector.load %arg4[%c1_17, %c0_18, %c0_19] : memref<4x8x128xf32, #tpu.memory_space<vmem>>, vector<1x8x128xf32>
    %50 = vector.shape_cast %49 : vector<1x8x128xf32> to vector<8x128xf32>
    %51 = vector.shape_cast %48 : vector<8x128xf32> to vector<1x8x128xf32>
    tpu.vector_store %arg4[%c1_17, %c0_18, %c0_19], %51 {strides = array<i32>} : memref<4x8x128xf32, #tpu.memory_space<vmem>>, vector<1x8x128xf32>,
    %c2 = arith.constant 2 : index
    %c0_20 = arith.constant 0 : index
    %c0_21 = arith.constant 0 : index
    %52 = vector.load %arg2[%c2, %c0_20, %c0_21] : memref<4x8x512xf32, #tpu.memory_space<vmem>>, vector<1x8x512xf32>
    %53 = vector.shape_cast %52 : vector<1x8x512xf32> to vector<8x512xf32>
    %cst_22 = arith.constant dense<0.000000e+00> : vector<8x512xf32>
    %54 = tpu.matmul %48, %3, %cst_22 {dimension_numbers = #tpu.dot_dimension_numbers<[1], [0], [0], [1], [0, 0, 1, 1], [], []>} : vector<8x128xf32>, vector<128x512xf32>, vector<8x512xf32> -> vector<8x512xf32>
    %55 = arith.addf %53, %54 : vector<8x512xf32>
    %56 = vector.extract_strided_slice %55 {offsets = [0, 0], sizes = [8, 384], strides = [1, 1]} : vector<8x512xf32> to vector<8x384xf32>
    %57 = arith.negf %56 : vector<8x384xf32>
    %58 = math.exp %57 : vector<8x384xf32>
    %cst_23 = arith.constant 1.000000e+00 : f32
    %59 = vector.broadcast %cst_23 : f32 to vector<8x384xf32>
    %60 = arith.addf %59, %58 : vector<8x384xf32>
    %61 = arith.divf %59, %60 : vector<8x384xf32>
    %62 = vector.extract_strided_slice %55 {offsets = [0, 384], sizes = [8, 128], strides = [1, 1]} : vector<8x512xf32> to vector<8x128xf32>
    %63 = math.tanh %62 : vector<8x128xf32>
    %64 = vector.extract_strided_slice %61 {offsets = [0, 0], sizes = [8, 128], strides = [1, 1]} : vector<8x384xf32> to vector<8x128xf32>
    %65 = vector.extract_strided_slice %61 {offsets = [0, 128], sizes = [8, 128], strides = [1, 1]} : vector<8x384xf32> to vector<8x128xf32>
    %66 = vector.extract_strided_slice %61 {offsets = [0, 256], sizes = [8, 128], strides = [1, 1]} : vector<8x384xf32> to vector<8x128xf32>
    %67 = arith.mulf %65, %46 : vector<8x128xf32>
    %68 = arith.mulf %64, %63 : vector<8x128xf32>
    %69 = arith.addf %67, %68 : vector<8x128xf32>
    %70 = math.tanh %69 : vector<8x128xf32>
    %71 = arith.mulf %66, %70 : vector<8x128xf32>
    %c2_24 = arith.constant 2 : index
    %c0_25 = arith.constant 0 : index
    %c0_26 = arith.constant 0 : index
    %72 = vector.load %arg4[%c2_24, %c0_25, %c0_26] : memref<4x8x128xf32, #tpu.memory_space<vmem>>, vector<1x8x128xf32>
    %73 = vector.shape_cast %72 : vector<1x8x128xf32> to vector<8x128xf32>
    %74 = vector.shape_cast %71 : vector<8x128xf32> to vector<1x8x128xf32>
    tpu.vector_store %arg4[%c2_24, %c0_25, %c0_26], %74 {strides = array<i32>} : memref<4x8x128xf32, #tpu.memory_space<vmem>>, vector<1x8x128xf32>,
    %c3 = arith.constant 3 : index
    %c0_27 = arith.constant 0 : index
    %c0_28 = arith.constant 0 : index
    %75 = vector.load %arg2[%c3, %c0_27, %c0_28] : memref<4x8x512xf32, #tpu.memory_space<vmem>>, vector<1x8x512xf32>
    %76 = vector.shape_cast %75 : vector<1x8x512xf32> to vector<8x512xf32>
    %cst_29 = arith.constant dense<0.000000e+00> : vector<8x512xf32>
    %77 = tpu.matmul %71, %3, %cst_29 {dimension_numbers = #tpu.dot_dimension_numbers<[1], [0], [0], [1], [0, 0, 1, 1], [], []>} : vector<8x128xf32>, vector<128x512xf32>, vector<8x512xf32> -> vector<8x512xf32>
    %78 = arith.addf %76, %77 : vector<8x512xf32>
    %79 = vector.extract_strided_slice %78 {offsets = [0, 0], sizes = [8, 384], strides = [1, 1]} : vector<8x512xf32> to vector<8x384xf32>
    %80 = arith.negf %79 : vector<8x384xf32>
    %81 = math.exp %80 : vector<8x384xf32>
    %cst_30 = arith.constant 1.000000e+00 : f32
    %82 = vector.broadcast %cst_30 : f32 to vector<8x384xf32>
    %83 = arith.addf %82, %81 : vector<8x384xf32>
    %84 = arith.divf %82, %83 : vector<8x384xf32>
    %85 = vector.extract_strided_slice %78 {offsets = [0, 384], sizes = [8, 128], strides = [1, 1]} : vector<8x512xf32> to vector<8x128xf32>
    %86 = math.tanh %85 : vector<8x128xf32>
    %87 = vector.extract_strided_slice %84 {offsets = [0, 0], sizes = [8, 128], strides = [1, 1]} : vector<8x384xf32> to vector<8x128xf32>
    %88 = vector.extract_strided_slice %84 {offsets = [0, 128], sizes = [8, 128], strides = [1, 1]} : vector<8x384xf32> to vector<8x128xf32>
    %89 = vector.extract_strided_slice %84 {offsets = [0, 256], sizes = [8, 128], strides = [1, 1]} : vector<8x384xf32> to vector<8x128xf32>
    %90 = arith.mulf %88, %69 : vector<8x128xf32>
    %91 = arith.mulf %87, %86 : vector<8x128xf32>
    %92 = arith.addf %90, %91 : vector<8x128xf32>
    %93 = math.tanh %92 : vector<8x128xf32>
    %94 = arith.mulf %89, %93 : vector<8x128xf32>
    %c3_31 = arith.constant 3 : index
    %c0_32 = arith.constant 0 : index
    %c0_33 = arith.constant 0 : index
    %95 = vector.load %arg4[%c3_31, %c0_32, %c0_33] : memref<4x8x128xf32, #tpu.memory_space<vmem>>, vector<1x8x128xf32>
    %96 = vector.shape_cast %95 : vector<1x8x128xf32> to vector<8x128xf32>
    %97 = vector.shape_cast %94 : vector<8x128xf32> to vector<1x8x128xf32>
    tpu.vector_store %arg4[%c3_31, %c0_32, %c0_33], %97 {strides = array<i32>} : memref<4x8x128xf32, #tpu.memory_space<vmem>>, vector<1x8x128xf32>,
    %c0_34 = arith.constant 0 : index
    %c0_35 = arith.constant 0 : index
    %98 = vector.load %arg5[%c0_34, %c0_35] : memref<8x128xf32, #tpu.memory_space<vmem>>, vector<8x128xf32>
    tpu.vector_store %arg5[%c0_34, %c0_35], %94 {strides = array<i32>} : memref<8x128xf32, #tpu.memory_space<vmem>>, vector<8x128xf32>,
    %c0_36 = arith.constant 0 : index
    %c0_37 = arith.constant 0 : index
    %99 = vector.load %arg6[%c0_36, %c0_37] : memref<8x128xf32, #tpu.memory_space<vmem>>, vector<8x128xf32>
    tpu.vector_store %arg6[%c0_36, %c0_37], %92 {strides = array<i32>} : memref<8x128xf32, #tpu.memory_space<vmem>>, vector<8x128xf32>,
    return
  }
  func.func @transform_0(%arg0: i32, %arg1: i32) -> (i32, i32, i32) {
    %c0_i32 = arith.constant 0 : i32
    %c0_i32_0 = arith.constant 0 : i32
    return %arg1, %arg0, %c0_i32 : i32, i32, i32
  }
  func.func @transform_1(%arg0: i32, %arg1: i32) -> (i32, i32) {
    %c0_i32 = arith.constant 0 : i32
    %c0_i32_0 = arith.constant 0 : i32
    %c0_i32_1 = arith.constant 0 : i32
    return %c0_i32, %c0_i32_0 : i32, i32
  }
  func.func @transform_2(%arg0: i32, %arg1: i32) -> (i32, i32, i32) {
    %c0_i32 = arith.constant 0 : i32
    %c0_i32_0 = arith.constant 0 : i32
    return %arg1, %arg0, %c0_i32 : i32, i32, i32
  }
}

</mosaic_0001>

<bundles_post_ra>
// kernel: tpu_custom_call.1
= control target key start
LH: loop header
LB: loop body
LE: loop exit
PB: predicated region body
PF: predicated region fallthrough
CT: control target
= control target key end

     0   :  { %7 = vsyncpa [#allocation5], 0  ;;  %s2059_s0 = inlined_call_operand.hbm [shape: f32[8,8,512], index: 0, kind: input, shape index: {}]   ;;  %s2060_s1 = inlined_call_operand.hbm [shape: f32[128,512], index: 1, kind: input, shape index: {}]   ;;  %s2061_s2 = inlined_call_operand.hbm [shape: f32[8,8,128], index: 2, kind: output, shape index: {}]  }
   0x1   :  { %9 = vsyncpa [#allocation5 + $0x1], 0 }
   0x2   :  { %10 = vsyncpa [#allocation8], 0 }
   0x3   :  { %11 = vsyncpa [#allocation6], 0 }
   0x4   :  { %13 = vsyncpa [#allocation6 + $0x1], 0  ;;  %s1445_s9 = smov 0   ;;  %s1447_s10 = smov 0  }
   0x5   :  { %s1449_s11 = smov 0   ;;  %s1451_s12 = smov 0  }
   0x6   :  { %s1453_s13 = smov 0   ;;  %s1455_s14 = smov 0  }
   0x7 LB: > { %s1089_s15 = sadd.s32 4294967295, %s1419_s14   ;;  %s1090_s16 = sadd.s32 4294967294, %s1419_s14   ;;  %s1419_s14 = sphi %s1455_s14, %s19_s14   ;;  %s1415_s13 = sphi %s1453_s13, %s2181_s13   ;;  %s1411_s12 = sphi %s1451_s12, %s2180_s12   ;;  %s1407_s11 = sphi %s1449_s11, %s2179_s11   ;;  %s1403_s10 = sphi %s1447_s10, %s2178_s10   ;;  %s1399_s9 = sphi %s1445_s9, %s2177_s9  }
   0x8   : > { %p53_p0 = scmp.ne.s32.totalorder %s1403_s10, %s1399_s9  ;;  %p1479_p1 = scmp.eq.s32.totalorder %s1089_s15, 0 }
   0x9   : > { %p1483_p2 = scmp.eq.s32.totalorder %s1089_s15, 1  ;;  %p106_p3 = scmp.eq.s32.totalorder %s1090_s16, 1 }
   0xa   : > { %p1489_p4 = por %p1479_p1, %p53_p0  ;;  %p1091_p5 = scmp.ge.s32.totalorder %s1419_s14, 1 }
   0xb   : > { %p1494_p6 = por %p106_p3, %p53_p0  ;;  %p113_p7 = scmp.lt.s32.totalorder %s1419_s14, 3 }
   0xc   : > { %s2106_s19 = scalar_select %p1489_p4, 1, 0 }
   0xd   : > { %s2107_s20 = scalar_select %p1494_p6, 1, 0 }
   0xe   : > { %p1499_p8 = pnand %p1091_p5, %p113_p7  ;;  %s1421_s22 = smov [#allocation7]  }
   0xf   : > { %s125_s23 = sshll.u32 %s1421_s22, 4  ;;  %s28_s25 = sadd.s32 1, %s1415_s13  ;;  %s126_s23 = int_to_ptr.vmem [resolvable:$true] %s125_s23 }
  0x10   : > { %p1146_p9 = pneg %p1499_p8  ;;  %s1292_s26 = scalar_lea.vmem %s126_s23, 8192 }
  0x11   : > { %p1293_p13 = scmp.ne.s32.totalorder %s126_s23, %s1292_s26  ;;  %p1300_p5 = scmp.lt.s32.totalorder %s126_s23, %s126_s23 }
  0x12   : > { %p1508_p11 = pnand %p1146_p9, %p1479_p1  ;;  %p1301_p7 = scmp.lt.s32.totalorder %s1292_s26, %s1292_s26 }
  0x14   : > { %p1283_p12 = pneg %p1508_p11  ;;  %p1302_p6 = por %p1301_p7, %p1300_p5 }
  0x16   : > { %p1295_p0 = pnand %p1293_p13, %p1283_p12 }
  0x18   : > { %p1296_p3 = pneg %p1295_p0 }
  0x1a   : > { %p1303_p4 = pnand %p1302_p6, %p1296_p3 }
  0x1c   : > { %1306 = shalt.err (!%p1303_p4)
}
  0x1d   : > { %s2063_s27 = smov 512   ;;  %s1423_s28 = smov 32  }
  0x1e   : > { %1149 = dma.hbm_to_vmem [thread:$0]  (!%p1508_p11), %s2060_s1, 8192, %s126_s23, [#allocation8], %s2063_s27, %s2063_s27, %s1423_s28  }
  0x1f   : > { %p29_p4 = scmp.ge.s32.totalorder %s28_s25, 2  ;;  %s40_s3 = sadd.s32 1, %s1407_s11 }
  0x20   : > { %p47_p6 = scmp.ne.s32.totalorder %s1407_s11, %s1403_s10  ;;  %p48_p9 = scmp.eq.s32.totalorder %s1419_s14, 0 }
  0x21   : > { %s2183_s25 = smov (%p29_p4, %s28_s25), 0  ;;  %p1159_p0 = scmp.lt.s32.totalorder %s1419_s14, 2 }
  0x22   : > { %p1529_p12 = por %p48_p9, %p47_p6  ;;  %p1535_p13 = por %p1483_p2, %p47_p6 }
  0x23   : > { %s35_s6 = ssub.s32 %s1415_s13, %s2183_s25  ;;  %s139_s7 = sand.u32 1, %s1407_s11  }
  0x24   : > { %p38_p11 = scmp.eq.s32.totalorder %s35_s6, 0  ;;  %s1094_s8 = sshll.u32 %s139_s7, 7 }
  0x25   : > { %s1136_s16 = sshll.u32 %s1415_s13, 11  ;;  %s143_s26 = scalar_lea.vmem [#allocation4], %s1094_s8 }
  0x26   : > { %s1544_s15 = scalar_select %p38_p11, %s1407_s11, %s40_s3  }
  0x27   : > { %s152_s24 = scalar_lea.hbm %s2059_s0, %s1136_s16  ;;  %s153_s29 = sshll.u32 %s143_s26, 4  ;;  %s154_s29 = int_to_ptr.vmem [resolvable:$true] %s153_s29 }
  0x28   : > { %p1552_p2 = pnand %p1159_p0, %p1529_p12  ;;  %s140_s30 = scalar_lea.sflag [#allocation5], %s139_s7 }
  0x29   : > { %s1320_s6 = scalar_lea.vmem %s154_s29, 2048  ;;  %s1424_s3 = smov [#allocation4]  }
  0x2a   : > { %p1309_p3 = pneg %p1552_p2  ;;  %p1321_p5 = scmp.ne.s32.totalorder %s154_s29, %s1320_s6 }
  0x2b   : > { %s1325_s27 = sshll.u32 %s1424_s3, 4  ;;  %s1326_s27 = int_to_ptr.vmem [resolvable:$false] %s1325_s27 }
  0x2c   : > { %p1323_p7 = pnand %p1321_p5, %p1309_p3  ;;  %s1327_s16 = scalar_lea.vmem %s1326_s27, 4096 }
  0x2d   : > { %p1328_p6 = scmp.lt.s32.totalorder %s154_s29, %s1326_s27  ;;  %p1329_p9 = scmp.lt.s32.totalorder %s1327_s16, %s1320_s6 }
  0x2e   : > { %p1324_p4 = pneg %p1323_p7 }
  0x2f   : > { %p1330_p11 = por %p1329_p9, %p1328_p6 }
  0x31   : > { %p1331_p10 = pnand %p1330_p11, %p1324_p4 }
  0x33   : > { %1334 = shalt.err (!%p1331_p10)
}
  0x34   : > { %s2113_s4 = smov 512   ;;  %165 = sbr.rel (%p1499_p8) target bundleno = 1115 (0x45b), region = 28 }
  0x35   : > { %1153 = dma.hbm_to_vmem [thread:$0]  (!%p1552_p2), %s152_s24, 2048, %s154_s29, %s140_s30, %s2113_s4, %s2113_s4, %s1423_s28  }
  0x39   : > { %s1566_s7 = sand.u32 1, %s1403_s10   ;;  %p2114_p10 = scmp.ne.s32.totalorder %s2106_s19, 0 }
  0x3a   : > { %s1099_s27 = sshll.u32 %s1566_s7, 7  ;;  %s168_s8 = scalar_lea.sflag [#allocation5], %s1566_s7 }
  0x3b   : > { %s1570_s22 = scalar_lea.vmem [#allocation4], %s1099_s27 }
  0x3c   : > { %1386 = dma.done.wait (%p2114_p10), %s168_s8, 2048  }
  0x3d   : > { %1388 = vsyncadd (%p2114_p10), %s168_s8, 4294965248 }
  0x3e   : > { %1390 = dma.done.wait (%p1479_p1), [#allocation8], 8192  }
  0x3f   : > { %1392 = vsyncadd (%p1479_p1), [#allocation8], 4294959104  ;;  %s1101_s21 = sshll.u32 %s1566_s7, 5  ;;  %p1102_p8 = scmp.ne.s32.totalorder %s1411_s12, 0 }
  0x40   : > { %s1581_s28 = scalar_lea.vmem [#allocation9], %s1101_s21 }
  0x41   : > { %201 = sbr.rel (%p1102_p8) target bundleno = 72 (0x48), region = 40 }
  0x46   : > { %v1425_v0 = vmov 0.0  }
  0x47   : > { %202 = vst [vmem:[#allocation2] sm:$0xff] %v1425_v0  ;;  %203 = vst [vmem:[#allocation3] sm:$0xff] %v1425_v0 }
  0x48 PF: > { %v1584_v1 = vld [vmem:[#allocation7 + $0x1e8] sm:$0xff]  ;;  %v1586_v2 = vld [vmem:[#allocation7 + $0x1e0] sm:$0xff]  ;;  %v2064_v5 = vmov 0.0   ;;  %v1607_v10 = vld [vmem:[#allocation7 + $0x1f8] sm:$0xff]  ;;  %s1137_s17 = sshll.u32 %s1411_s12, 9  ;;  %s993_s19 = sshll.u32 %s1581_s28, 4  ;;  %s2010_s19 = int_to_ptr.vmem [resolvable:$true] %s993_s19 }
  0x49   : > { %2115 = vst [vmem:[#allocation13_spill] sm:$0xff] %v1584_v1  ;;  %v1588_v3 = vld [vmem:[#allocation7 + $0x1c8] sm:$0xff]  ;;  %274 = vmatprep.subr.mxu0 %v1584_v1  ;;  %v1591_v4 = vld [vmem:[#allocation7 + $0x1c0] sm:$0xff]  ;;  %338 = vmatprep.mubr.f32.mxu0 %v2064_v5  ;;  %2116 = vst [vmem:[#allocation14_spill] sm:$0xff] %v1607_v10  ;;  %s2008_s26 = scalar_lea.hbm %s2061_s2, %s1137_s17  ;;  %s979_s29 = scalar_lea.sflag [#allocation6], %s1566_s7 }
  0x4a   : > { %275 = vmatpush1.msra.mxu0 %v1586_v2  ;;  %v1595_v6 = vld [vmem:[#allocation7 + $0x1a8] sm:$0xff]  ;;  %409 = vmatprep.mubr.f32.mxu1 %v2064_v5  ;;  %v1599_v7 = vld [vmem:[#allocation7 + $0x1a0] sm:$0xff]  ;;  %v1613_v12 = vld [vmem:[#allocation7 + $0x1f0] sm:$0xff]  ;;  %s1335_s18 = scalar_lea.vmem %s2010_s19, 512  ;;  %s1427_s12 = smov [#allocation9]  }
  0x4b   : > { %276 = vmatprep.subr.mxu0 %v1588_v3  ;;  %v1602_v8 = vld [vmem:[#allocation7 + $0x188] sm:$0xff]  ;;  %v1605_v9 = vld [vmem:[#allocation7 + $0x180] sm:$0xff]  ;;  %345 = vmatprep.subr.mxu1 %v1607_v10  ;;  %v1619_v14 = vld [vmem:[#allocation7 + $0x1d8] sm:$0xff]  ;;  %p1336_p1 = scmp.ne.s32.totalorder %s2010_s19, %s1335_s18  ;;  %s1339_s30 = sshll.u32 %s1427_s12, 4  ;;  %s1340_s30 = int_to_ptr.vmem [resolvable:$false] %s1339_s30 }
  0x4c   : > { %277 = vmatpush1.msra.mxu0 %v1591_v4  ;;  %v1610_v11 = vld [vmem:[#allocation7 + $0x168] sm:$0xff]  ;;  %v1616_v13 = vld [vmem:[#allocation7 + $0x160] sm:$0xff]  ;;  %346 = vmatpush1.msra.mxu1 %v1613_v12  ;;  %v1621_v15 = vld [vmem:[#allocation7 + $0x1d0] sm:$0xff]  ;;  %s1341_s6 = scalar_lea.vmem %s1340_s30, 1024  ;;  %p1342_p2 = scmp.lt.s32.totalorder %s2010_s19, %s1340_s30 }
  0x4d   : > { %278 = vmatprep.subr.mxu0 %v1595_v6  ;;  %v1624_v16 = vld [vmem:[#allocation7 + $0x148] sm:$0xff]  ;;  %347 = vmatprep.subr.mxu1 %v1619_v14  ;;  %v1627_v17 = vld [vmem:[#allocation7 + $0x1b8] sm:$0xff]  ;;  %v1630_v18 = vld [vmem:[#allocation7 + $0x140] sm:$0xff]  ;;  %p1337_p12 = pnand %p1336_p1, %p1535_p13  ;;  %p1343_p3 = scmp.lt.s32.totalorder %s1341_s6, %s1335_s18 }
  0x4e   : > { %279 = vmatpush1.msra.mxu0 %v1599_v7  ;;  %348 = vmatpush1.msra.mxu1 %v1621_v15  ;;  %v1633_v19 = vld [vmem:[#allocation7 + $0x1b0] sm:$0xff]  ;;  %v1635_v20 = vld [vmem:[#allocation7 + $0x198] sm:$0xff]  ;;  %v1638_v21 = vld [vmem:[#allocation7 + $0x128] sm:$0xff] }
  0x4f   : > { %280 = vmatprep.subr.mxu0 %v1602_v8  ;;  %349 = vmatprep.subr.mxu1 %v1627_v17  ;;  %v1641_v22 = vld [vmem:[#allocation7 + $0x190] sm:$0xff]  ;;  %v1644_v23 = vld [vmem:[#allocation7 + $0x120] sm:$0xff]  ;;  %v1647_v24 = vld [vmem:[#allocation7 + $0x178] sm:$0xff]  ;;  %p1338_p0 = pneg %p1337_p12  ;;  %p1344_p5 = por %p1343_p3, %p1342_p2 }
  0x50   : > { %281 = vmatpush1.msra.mxu0 %v1605_v9  ;;  %350 = vmatpush1.msra.mxu1 %v1633_v19  ;;  %v1650_v25 = vld [vmem:[#allocation7 + $0x108] sm:$0xff]  ;;  %v1653_v26 = vld [vmem:[#allocation7 + $0x170] sm:$0xff]  ;;  %v1656_v27 = vld [vmem:[#allocation7 + $0x100] sm:$0xff] }
  0x51   : > { %282 = vmatprep.subr.mxu0 %v1610_v11  ;;  %351 = vmatprep.subr.mxu1 %v1635_v20  ;;  %v1659_v28 = vld [vmem:[#allocation7 + $0x158] sm:$0xff]  ;;  %v1662_v29 = vld [vmem:[#allocation7 + $0xe8] sm:$0xff]  ;;  %v1665_v30 = vld [vmem:[#allocation7 + $0x150] sm:$0xff]  ;;  %p1345_p7 = pnand %p1344_p5, %p1338_p0 }
  0x52   : > { %283 = vmatpush1.msra.mxu0 %v1616_v13  ;;  %352 = vmatpush1.msra.mxu1 %v1641_v22  ;;  %v1668_v31 = vld [vmem:[#allocation7 + $0xe0] sm:$0xff]  ;;  %v1671_v32 = vld [vmem:[#allocation7 + $0x138] sm:$0xff]  ;;  %v1674_v33 = vld [vmem:[#allocation7 + $0xc8] sm:$0xff] }
  0x53   : > { %284 = vmatprep.subr.mxu0 %v1624_v16  ;;  %353 = vmatprep.subr.mxu1 %v1647_v24  ;;  %v1677_v34 = vld [vmem:[#allocation7 + $0x130] sm:$0xff]  ;;  %v1680_v35 = vld [vmem:[#allocation7 + $0xc0] sm:$0xff]  ;;  %v1683_v36 = vld [vmem:[#allocation7 + $0x118] sm:$0xff] }
  0x54   : > { %285 = vmatpush1.msra.mxu0 %v1630_v18  ;;  %354 = vmatpush1.msra.mxu1 %v1653_v26  ;;  %v1686_v37 = vld [vmem:[#allocation7 + $0xa8] sm:$0xff]  ;;  %v1689_v38 = vld [vmem:[#allocation7 + $0x110] sm:$0xff]  ;;  %v1692_v39 = vld [vmem:[#allocation7 + $0xa0] sm:$0xff] }
  0x55   : > { %286 = vmatprep.subr.mxu0 %v1638_v21  ;;  %355 = vmatprep.subr.mxu1 %v1659_v28  ;;  %v1695_v40 = vld [vmem:[#allocation7 + $0xf8] sm:$0xff]  ;;  %v1698_v41 = vld [vmem:[#allocation7 + $0x88] sm:$0xff]  ;;  %v1701_v42 = vld [vmem:[#allocation7 + $0xf0] sm:$0xff] }
  0x56   : > { %287 = vmatpush1.msra.mxu0 %v1644_v23  ;;  %356 = vmatpush1.msra.mxu1 %v1665_v30  ;;  %v1704_v43 = vld [vmem:[#allocation7 + $0x80] sm:$0xff]  ;;  %v1707_v44 = vld [vmem:[#allocation7 + $0xd8] sm:$0xff]  ;;  %v1710_v45 = vld [vmem:[#allocation7 + $0x68] sm:$0xff] }
  0x57   : > { %288 = vmatprep.subr.mxu0 %v1650_v25  ;;  %357 = vmatprep.subr.mxu1 %v1671_v32  ;;  %2117 = vst [vmem:[#allocation15_spill] sm:$0xff] %v1704_v43  ;;  %2118 = vst [vmem:[#allocation16_spill] sm:$0xff] %v1710_v45  ;;  %v1713_v46 = vld [vmem:[#allocation7 + $0xd0] sm:$0xff]  ;;  %v1716_v47 = vld [vmem:[#allocation7 + $0x60] sm:$0xff] }
  0x58   : > { %289 = vmatpush1.msra.mxu0 %v1656_v27  ;;  %358 = vmatpush1.msra.mxu1 %v1677_v34  ;;  %2119 = vst [vmem:[#allocation17_spill] sm:$0xff] %v1716_v47  ;;  %v1719_v48 = vld [vmem:[#allocation7 + $0xb8] sm:$0xff]  ;;  %v1722_v49 = vld [vmem:[#allocation7 + $0x48] sm:$0xff]  ;;  %v1725_v50 = vld [vmem:[#allocation7 + $0xb0] sm:$0xff] }
  0x59   : > { %290 = vmatprep.subr.mxu0 %v1662_v29  ;;  %359 = vmatprep.subr.mxu1 %v1683_v36  ;;  %2120 = vst [vmem:[#allocation18_spill] sm:$0xff] %v1722_v49  ;;  %v1728_v51 = vld [vmem:[#allocation7 + $0x40] sm:$0xff]  ;;  %v1731_v52 = vld [vmem:[#allocation7 + $0x98] sm:$0xff]  ;;  %v1734_v53 = vld [vmem:[#allocation7 + $0x28] sm:$0xff] }
  0x5a   : > { %291 = vmatpush1.msra.mxu0 %v1668_v31  ;;  %360 = vmatpush1.msra.mxu1 %v1689_v38  ;;  %2121 = vst [vmem:[#allocation19_spill] sm:$0xff] %v1728_v51  ;;  %2122 = vst [vmem:[#allocation20_spill] sm:$0xff] %v1734_v53  ;;  %v1737_v54 = vld [vmem:[#allocation7 + $0x90] sm:$0xff]  ;;  %v1740_v55 = vld [vmem:[#allocation7 + $0x20] sm:$0xff] }
  0x5b   : > { %292 = vmatprep.subr.mxu0 %v1674_v33  ;;  %361 = vmatprep.subr.mxu1 %v1695_v40  ;;  %2123 = vst [vmem:[#allocation21_spill] sm:$0xff] %v1737_v54  ;;  %2124 = vst [vmem:[#allocation22_spill] sm:$0xff] %v1740_v55  ;;  %v1743_v56 = vld [vmem:[#allocation7 + $0x78] sm:$0xff]  ;;  %v1746_v57 = vld [vmem:[#allocation7 + $0x8] sm:$0xff] }
  0x5c   : > { %293 = vmatpush1.msra.mxu0 %v1680_v35  ;;  %362 = vmatpush1.msra.mxu1 %v1701_v42  ;;  %2125 = vst [vmem:[#allocation23_spill] sm:$0xff] %v1743_v56  ;;  %2126 = vst [vmem:[#allocation24_spill] sm:$0xff] %v1746_v57  ;;  %v1749_v58 = vld [vmem:[#allocation7 + $0x70] sm:$0xff]  ;;  %v1752_v59 = vld [vmem:[#allocation7] sm:$0xff] }
  0x5d   : > { %294 = vmatprep.subr.mxu0 %v1686_v37  ;;  %363 = vmatprep.subr.mxu1 %v1707_v44  ;;  %2127 = vst [vmem:[#allocation25_spill] sm:$0xff] %v1749_v58  ;;  %2128 = vst [vmem:[#allocation26_spill] sm:$0xff] %v1752_v59  ;;  %v1755_v60 = vld [vmem:[#allocation7 + $0x58] sm:$0xff]  ;;  %v268_v61 = vld [vmem:[#allocation2] sm:$0xff] }
  0x5e   : > { %295 = vmatpush1.msra.mxu0 %v1692_v39  ;;  %364 = vmatpush1.msra.mxu1 %v1713_v46  ;;  %2129 = vst [vmem:[#allocation27_spill] sm:$0xff] %v1755_v60  ;;  %v1759_v62 = vld [vmem:[#allocation7 + $0x50] sm:$0xff]  ;;  %v1763_v63 = vld [vmem:[#allocation7 + $0x38] sm:$0xff] }
  0x5f   : > { %296 = vmatprep.subr.mxu0 %v1698_v41  ;;  %365 = vmatprep.subr.mxu1 %v1719_v48  ;;  %2130 = vst [vmem:[#allocation28_spill] sm:$0xff] %v1759_v62  ;;  %2131 = vst [vmem:[#allocation29_spill] sm:$0xff] %v1763_v63  ;;  %v1767_v0 = vld [vmem:[#allocation7 + $0x30] sm:$0xff]  ;;  %v1770_v5 = vld [vmem:[#allocation7 + $0x18] sm:$0xff] }
  0x60   : > { %297 = vmatpush1.msra.mxu0 %v1704_v43  ;;  %366 = vmatpush1.msra.mxu1 %v1725_v50  ;;  %2132 = vst [vmem:[#allocation30_spill] sm:$0xff] %v1767_v0  ;;  %2133 = vst [vmem:[#allocation31_spill] sm:$0xff] %v1770_v5 }
  0x61   : > { %298 = vmatprep.subr.mxu0 %v1710_v45  ;;  %367 = vmatprep.subr.mxu1 %v1731_v52 }
  0x62   : > { %299 = vmatpush1.msra.mxu0 %v1716_v47  ;;  %368 = vmatpush1.msra.mxu1 %v1737_v54 }
  0x63   : > { %300 = vmatprep.subr.mxu0 %v1722_v49  ;;  %369 = vmatprep.subr.mxu1 %v1743_v56 }
  0x64   : > { %301 = vmatpush1.msra.mxu0 %v1728_v51  ;;  %370 = vmatpush1.msra.mxu1 %v1749_v58 }
  0x65   : > { %302 = vmatprep.subr.mxu0 %v1734_v53  ;;  %371 = vmatprep.subr.mxu1 %v1755_v60 }
  0x66   : > { %303 = vmatpush1.msra.mxu0 %v1740_v55  ;;  %372 = vmatpush1.msra.mxu1 %v1759_v62  ;;  %v1773_v55 = vld [vmem:[#allocation7 + $0x10] sm:$0xff] }
  0x67   : > { %304 = vmatprep.subr.mxu0 %v1746_v57  ;;  %373 = vmatprep.subr.mxu1 %v1763_v63  ;;  %2134 = vst [vmem:[#allocation32_spill] sm:$0xff] %v1773_v55 }
  0x68   : > { %305 = vmatpush1.msra.mxu0 %v1752_v59  ;;  %374 = vmatpush1.msra.mxu1 %v1767_v0 }
  0x69   : > { %339 = vmatmul.mubr.f32.vlgmr.msra.gmra.mxu0 %v268_v61  ;;  %450 = vmatprep.subr.mxu0 %v1584_v1 }
  0x6a   : > { %451 = vmatpush1.msra.mxu0 %v1586_v2  ;;  %375 = vmatprep.subr.mxu1 %v1770_v5 }
  0x6b   : > { %452 = vmatprep.subr.mxu0 %v1588_v3  ;;  %376 = vmatpush1.msra.mxu1 %v1773_v55 }
  0x6c   : > { %453 = vmatpush1.msra.mxu0 %v1591_v4  ;;  %410 = vmatmul.mubr.f32.vlgmr.msra.gmra.mxu1 %v268_v61  ;;  %v2135_v61 = vld [vmem:[#allocation22_spill] sm:$0xff] }
  0x6d   : > { %521 = vmatprep.subr.mxu1 %v1607_v10  ;;  %454 = vmatprep.subr.mxu0 %v1595_v6 }
  0x6e   : > { %522 = vmatpush1.msra.mxu1 %v1613_v12  ;;  %455 = vmatpush1.msra.mxu0 %v1599_v7 }
  0x6f   : > { %523 = vmatprep.subr.mxu1 %v1619_v14  ;;  %456 = vmatprep.subr.mxu0 %v1602_v8 }
  0x70   : > { %524 = vmatpush1.msra.mxu1 %v1621_v15  ;;  %457 = vmatpush1.msra.mxu0 %v1605_v9 }
  0x71   : > { %525 = vmatprep.subr.mxu1 %v1627_v17  ;;  %458 = vmatprep.subr.mxu0 %v1610_v11 }
  0x72   : > { %526 = vmatpush1.msra.mxu1 %v1633_v19  ;;  %459 = vmatpush1.msra.mxu0 %v1616_v13 }
  0x73   : > { %527 = vmatprep.subr.mxu1 %v1635_v20  ;;  %460 = vmatprep.subr.mxu0 %v1624_v16 }
  0x74   : > { %528 = vmatpush1.msra.mxu1 %v1641_v22  ;;  %461 = vmatpush1.msra.mxu0 %v1630_v18 }
  0x75   : > { %529 = vmatprep.subr.mxu1 %v1647_v24  ;;  %462 = vmatprep.subr.mxu0 %v1638_v21 }
  0x76   : > { %530 = vmatpush1.msra.mxu1 %v1653_v26  ;;  %463 = vmatpush1.msra.mxu0 %v1644_v23 }
  0x77   : > { %531 = vmatprep.subr.mxu1 %v1659_v28  ;;  %464 = vmatprep.subr.mxu0 %v1650_v25 }
  0x78   : > { %532 = vmatpush1.msra.mxu1 %v1665_v30  ;;  %465 = vmatpush1.msra.mxu0 %v1656_v27 }
  0x79   : > { %533 = vmatprep.subr.mxu1 %v1671_v32  ;;  %466 = vmatprep.subr.mxu0 %v1662_v29 }
  0x7a   : > { %534 = vmatpush1.msra.mxu1 %v1677_v34  ;;  %467 = vmatpush1.msra.mxu0 %v1668_v31 }
  0x7b   : > { %535 = vmatprep.subr.mxu1 %v1683_v36  ;;  %468 = vmatprep.subr.mxu0 %v1674_v33 }
  0x7c   : > { %536 = vmatpush1.msra.mxu1 %v1689_v38  ;;  %469 = vmatpush1.msra.mxu0 %v1680_v35 }
  0x7d   : > { %537 = vmatprep.subr.mxu1 %v1695_v40  ;;  %470 = vmatprep.subr.mxu0 %v1686_v37 }
  0x7e   : > { %538 = vmatpush1.msra.mxu1 %v1701_v42  ;;  %471 = vmatpush1.msra.mxu0 %v1692_v39 }
  0x7f   : > { %539 = vmatprep.subr.mxu1 %v1707_v44  ;;  %472 = vmatprep.subr.mxu0 %v1698_v41 }
  0x80   : > { %540 = vmatpush1.msra.mxu1 %v1713_v46  ;;  %473 = vmatpush1.msra.mxu0 %v1704_v43 }
  0x81   : > { %541 = vmatprep.subr.mxu1 %v1719_v48  ;;  %474 = vmatprep.subr.mxu0 %v1710_v45 }
  0x82   : > { %542 = vmatpush1.msra.mxu1 %v1725_v50  ;;  %475 = vmatpush1.msra.mxu0 %v1716_v47 }
  0x83   : > { %543 = vmatprep.subr.mxu1 %v1731_v52  ;;  %476 = vmatprep.subr.mxu0 %v1722_v49 }
  0x84   : > { %544 = vmatpush1.msra.mxu1 %v1737_v54  ;;  %477 = vmatpush1.msra.mxu0 %v1728_v51  ;;  %v2136_v51 = vmov 0.0  }
  0x85   : > { %545 = vmatprep.subr.mxu1 %v1743_v56  ;;  %478 = vmatprep.subr.mxu0 %v1734_v53 }
  0x86   : > { %546 = vmatpush1.msra.mxu1 %v1749_v58  ;;  %479 = vmatpush1.msra.mxu0 %v2135_v61  ;;  %v273_v58 = vld [vmem:[%s1570_s22 + $0x18] sm:$0xff] }
  0x87   : > { %547 = vmatprep.subr.mxu1 %v1755_v60  ;;  %480 = vmatprep.subr.mxu0 %v1746_v57  ;;  %v270_v57 = vld [vmem:[%s1570_s22] sm:$0xff] }
  0x88   : > { %548 = vmatpush1.msra.mxu1 %v1759_v62  ;;  %481 = vmatpush1.msra.mxu0 %v1752_v59 }
  0x89   : > { %549 = vmatprep.subr.mxu1 %v1763_v63  ;;  %514 = vmatprep.mubr.f32.mxu0 %v2136_v51  ;;  %v271_v63 = vld [vmem:[%s1570_s22 + $0x8] sm:$0xff] }
  0x8a   : > { %550 = vmatpush1.msra.mxu1 %v1767_v0  ;;  %585 = vmatprep.mubr.f32.mxu1 %v2136_v51 }
  0x8b   : > { %551 = vmatprep.subr.mxu1 %v1770_v5  ;;  %627 = vmatprep.subr.mxu0 %v1584_v1  ;;  %v272_v5 = vld [vmem:[%s1570_s22 + $0x10] sm:$0xff] }
  0x8c   : > { %552 = vmatpush1.msra.mxu1 %v1773_v55 }
  0x8d   : > { %698 = vmatprep.subr.mxu1 %v1607_v10 }
 0x129   : > { %v340_v61 = vpop.f32.mrf.mxu0 }
 0x12a   : > { %v416_v59 = vadd.f32 %v340_v61, %v270_v57 }
 0x12b   : > { %v342_v53 = vpop.f32.mrf.mxu0 }
 0x12c   : > { %v1103_v0 = vmul.f32 -1.442695, %v416_v59  ;;  %v417_v62 = vadd.f32 %v342_v53, %v271_v63  ;;  %v411_v49 = vpop.f32.mrf.mxu1 }
 0x12d   : > { %v418_v51 = vadd.f32 %v411_v49, %v272_v5 }
 0x12e   : > { %1217 = vpow2.f32 %v1103_v0  ;;  %v1104_v60 = vmul.f32 -1.442695, %v417_v62  ;;  %v413_v55 = vpop.f32.mrf.mxu1 }
 0x12f   : > { %v1105_v47 = vmul.f32 -1.442695, %v418_v51  ;;  %v419_v56 = vadd.f32 %v413_v55, %v273_v58  ;;  %v2139_v55 = vld [vmem:[#allocation17_spill] sm:$0xff]  ;;  %v2141_v58 = vld [vmem:[#allocation18_spill] sm:$0xff] }
 0x130   : > { %1219 = vpow2.f32 %v1104_v60  ;;  %v269_v60 = vld [vmem:[#allocation3] sm:$0xff] }
 0x131   : > { %1221 = vpow2.f32 %v1105_v47 }
 0x132   : > { %1223 = vtanh.f32 %v419_v56  ;;  %v2140_v56 = vld [vmem:[#allocation25_spill] sm:$0xff] }
 0x13b   : > { %v1218_v1 = vpop.eup %1217 }
 0x13c   : > { %v429_v45 = vadd.f32 1.0, %v1218_v1 }
 0x13d   : > { %v1220_v10 = vpop.eup %1219 }
 0x13e   : > { %1225 = vrcp.f32 %v429_v45  ;;  %v430_v57 = vadd.f32 1.0, %v1220_v10  ;;  %v1222_v53 = vpop.eup %1221  ;;  %v2137_v10 = vld [vmem:[#allocation16_spill] sm:$0xff]  ;;  %v2138_v45 = vld [vmem:[#allocation23_spill] sm:$0xff] }
 0x13f   : > { %v1224_v59 = vpop.eup %1223  ;;  %v431_v0 = vadd.f32 1.0, %v1222_v53  ;;  %v2143_v53 = vld [vmem:[#allocation19_spill] sm:$0xff] }
 0x140   : > { %1227 = vrcp.f32 %v430_v57  ;;  %v2142_v57 = vld [vmem:[#allocation27_spill] sm:$0xff] }
 0x141   : > { %1229 = vrcp.f32 %v431_v0  ;;  %v2148_v0 = vld [vmem:[#allocation30_spill] sm:$0xff] }
 0x14b   : > { %v1226_v62 = vpop.eup %1225 }
 0x14c   : > { %v440_v49 = vmul.f32 %v1226_v62, %v1224_v59  ;;  %v2144_v59 = vld [vmem:[#allocation28_spill] sm:$0xff] }
 0x14d   : > { %v1228_v63 = vpop.eup %1227  ;;  %v2145_v62 = vld [vmem:[#allocation20_spill] sm:$0xff] }
 0x14e   : > { %v439_v5 = vmul.f32 %v1228_v63, %v269_v60  ;;  %v1230_v1 = vpop.eup %1229  ;;  %v2146_v60 = vld [vmem:[#allocation29_spill] sm:$0xff]  ;;  %v2147_v63 = vld [vmem:[#allocation22_spill] sm:$0xff] }
 0x150   : > { %v1850_v61 = vadd.f32 %v440_v49, %v439_v5  ;;  %v2149_v5 = vld [vmem:[#allocation24_spill] sm:$0xff]  ;;  %v2150_v49 = vld [vmem:[#allocation31_spill] sm:$0xff] }
 0x152   : > { %1231 = vtanh.f32 %v1850_v61 }
 0x15f   : > { %v1232_v47 = vpop.eup %1231 }
 0x160   : > { %v443_v51 = vmul.f32 %v1232_v47, %v1230_v1  ;;  %v2151_v1 = vld [vmem:[#allocation26_spill] sm:$0xff]  ;;  %v2152_v47 = vmov 0.0  }
 0x162   : > { %444 = vst [vmem:[%s1581_s28] sm:$0xff] %v443_v51  ;;  %515 = vmatmul.mubr.f32.vlgmr.msra.gmra.mxu0 %v443_v51  ;;  %586 = vmatmul.mubr.f32.vlgmr.msra.gmra.mxu1 %v443_v51  ;;  %v2153_v51 = vld [vmem:[#allocation32_spill] sm:$0xff] }
 0x163   : > { %628 = vmatpush1.msra.mxu0 %v1586_v2  ;;  %699 = vmatpush1.msra.mxu1 %v1613_v12 }
 0x164   : > { %629 = vmatprep.subr.mxu0 %v1588_v3  ;;  %700 = vmatprep.subr.mxu1 %v1619_v14 }
 0x165   : > { %630 = vmatpush1.msra.mxu0 %v1591_v4  ;;  %701 = vmatpush1.msra.mxu1 %v1621_v15 }
 0x166   : > { %631 = vmatprep.subr.mxu0 %v1595_v6  ;;  %702 = vmatprep.subr.mxu1 %v1627_v17 }
 0x167   : > { %632 = vmatpush1.msra.mxu0 %v1599_v7  ;;  %703 = vmatpush1.msra.mxu1 %v1633_v19 }
 0x168   : > { %633 = vmatprep.subr.mxu0 %v1602_v8  ;;  %704 = vmatprep.subr.mxu1 %v1635_v20 }
 0x169   : > { %634 = vmatpush1.msra.mxu0 %v1605_v9  ;;  %705 = vmatpush1.msra.mxu1 %v1641_v22 }
 0x16a   : > { %635 = vmatprep.subr.mxu0 %v1610_v11  ;;  %706 = vmatprep.subr.mxu1 %v1647_v24 }
 0x16b   : > { %636 = vmatpush1.msra.mxu0 %v1616_v13  ;;  %707 = vmatpush1.msra.mxu1 %v1653_v26 }
 0x16c   : > { %637 = vmatprep.subr.mxu0 %v1624_v16  ;;  %708 = vmatprep.subr.mxu1 %v1659_v28 }
 0x16d   : > { %638 = vmatpush1.msra.mxu0 %v1630_v18  ;;  %709 = vmatpush1.msra.mxu1 %v1665_v30 }
 0x16e   : > { %639 = vmatprep.subr.mxu0 %v1638_v21  ;;  %710 = vmatprep.subr.mxu1 %v1671_v32 }
 0x16f   : > { %640 = vmatpush1.msra.mxu0 %v1644_v23  ;;  %711 = vmatpush1.msra.mxu1 %v1677_v34 }
 0x170   : > { %641 = vmatprep.subr.mxu0 %v1650_v25  ;;  %712 = vmatprep.subr.mxu1 %v1683_v36 }
 0x171   : > { %642 = vmatpush1.msra.mxu0 %v1656_v27  ;;  %713 = vmatpush1.msra.mxu1 %v1689_v38 }
 0x172   : > { %643 = vmatprep.subr.mxu0 %v1662_v29  ;;  %714 = vmatprep.subr.mxu1 %v1695_v40 }
 0x173   : > { %644 = vmatpush1.msra.mxu0 %v1668_v31  ;;  %715 = vmatpush1.msra.mxu1 %v1701_v42 }
 0x174   : > { %645 = vmatprep.subr.mxu0 %v1674_v33  ;;  %716 = vmatprep.subr.mxu1 %v1707_v44 }
 0x175   : > { %646 = vmatpush1.msra.mxu0 %v1680_v35  ;;  %717 = vmatpush1.msra.mxu1 %v1713_v46 }
 0x176   : > { %647 = vmatprep.subr.mxu0 %v1686_v37  ;;  %718 = vmatprep.subr.mxu1 %v1719_v48 }
 0x177   : > { %648 = vmatpush1.msra.mxu0 %v1692_v39  ;;  %719 = vmatpush1.msra.mxu1 %v1725_v50 }
 0x178   : > { %649 = vmatprep.subr.mxu0 %v1698_v41  ;;  %720 = vmatprep.subr.mxu1 %v1731_v52 }
 0x179   : > { %650 = vmatpush1.msra.mxu0 %v1704_v43  ;;  %721 = vmatpush1.msra.mxu1 %v1737_v54 }
 0x17a   : > { %651 = vmatprep.subr.mxu0 %v2137_v10  ;;  %722 = vmatprep.subr.mxu1 %v2138_v45 }
 0x17b   : > { %652 = vmatpush1.msra.mxu0 %v2139_v55  ;;  %723 = vmatpush1.msra.mxu1 %v2140_v56  ;;  %v1109_v55 = vld [vmem:[%s1570_s22 + $0x38] sm:$0xff] }
 0x17c   : > { %653 = vmatprep.subr.mxu0 %v2141_v58  ;;  %724 = vmatprep.subr.mxu1 %v2142_v57  ;;  %v1108_v58 = vld [vmem:[%s1570_s22 + $0x30] sm:$0xff] }
 0x17d   : > { %654 = vmatpush1.msra.mxu0 %v2143_v53  ;;  %725 = vmatpush1.msra.mxu1 %v2144_v59  ;;  %v1107_v59 = vld [vmem:[%s1570_s22 + $0x28] sm:$0xff] }
 0x17e   : > { %655 = vmatprep.subr.mxu0 %v2145_v62  ;;  %726 = vmatprep.subr.mxu1 %v2146_v60  ;;  %v2154_v62 = vld [vmem:[#allocation13_spill] sm:$0xff]  ;;  %v2155_v60 = vld [vmem:[#allocation14_spill] sm:$0xff] }
 0x17f   : > { %656 = vmatpush1.msra.mxu0 %v2147_v63  ;;  %727 = vmatpush1.msra.mxu1 %v2148_v0  ;;  %v1106_v63 = vld [vmem:[%s1570_s22 + $0x20] sm:$0xff] }
 0x180   : > { %657 = vmatprep.subr.mxu0 %v2149_v5  ;;  %728 = vmatprep.subr.mxu1 %v2150_v49 }
 0x181   : > { %658 = vmatpush1.msra.mxu0 %v2151_v1  ;;  %691 = vmatprep.mubr.f32.mxu0 %v2152_v47 }
 0x182   : > { %729 = vmatpush1.msra.mxu1 %v2153_v51  ;;  %762 = vmatprep.mubr.f32.mxu1 %v2152_v47 }
 0x183   : > { %804 = vmatprep.subr.mxu0 %v2154_v62  ;;  %875 = vmatprep.subr.mxu1 %v2155_v60 }
 0x222   : > { %v516_v0 = vpop.f32.mrf.mxu0  ;;  %v587_v56 = vpop.f32.mrf.mxu1 }
 0x223   : > { %v592_v5 = vadd.f32 %v1106_v63, %v516_v0  ;;  %v594_v51 = vadd.f32 %v1108_v58, %v587_v56 }
 0x224   : > { %v518_v53 = vpop.f32.mrf.mxu0  ;;  %v589_v47 = vpop.f32.mrf.mxu1 }
 0x225   : > { %v1110_v49 = vmul.f32 -1.442695, %v592_v5  ;;  %v593_v57 = vadd.f32 %v1107_v59, %v518_v53  ;;  %v1112_v45 = vmul.f32 -1.442695, %v594_v51  ;;  %v595_v62 = vadd.f32 %v1109_v55, %v589_v47  ;;  %v1122_v47 = vld [vmem:[%s1570_s22 + $0x60] sm:$0xff] }
 0x227   : > { %1233 = vpow2.f32 %v1110_v49  ;;  %v1111_v1 = vmul.f32 -1.442695, %v593_v57 }
 0x229   : > { %1235 = vpow2.f32 %v1111_v1 }
 0x22a   : > { %1237 = vpow2.f32 %v1112_v45 }
 0x234   : > { %v1234_v10 = vpop.eup %1233 }
 0x235   : > { %v605_v54 = vadd.f32 1.0, %v1234_v10 }
 0x236   : > { %v1236_v60 = vpop.eup %1235 }
 0x237   : > { %1239 = vrcp.f32 %v605_v54  ;;  %v606_v43 = vadd.f32 1.0, %v1236_v60  ;;  %v1238_v53 = vpop.eup %1237 }
 0x238   : > { %1241 = vtanh.f32 %v595_v62  ;;  %v607_v0 = vadd.f32 1.0, %v1238_v53  ;;  %v1123_v62 = vld [vmem:[%s1570_s22 + $0x68] sm:$0xff] }
 0x239   : > { %1243 = vrcp.f32 %v606_v43 }
 0x23a   : > { %1245 = vrcp.f32 %v607_v0  ;;  %v1124_v0 = vld [vmem:[%s1570_s22 + $0x70] sm:$0xff] }
 0x244   : > { %v1240_v59 = vpop.eup %1239 }
 0x245   : > { %v1242_v57 = vpop.eup %1241 }
 0x246   : > { %v1244_v63 = vpop.eup %1243  ;;  %v616_v58 = vmul.f32 %v1242_v57, %v1240_v59 }
 0x247   : > { %v615_v56 = vmul.f32 %v1244_v63, %v1850_v61  ;;  %v1246_v10 = vpop.eup %1245 }
 0x249   : > { %v1925_v5 = vadd.f32 %v616_v58, %v615_v56 }
 0x24b   : > { %1247 = vtanh.f32 %v1925_v5 }
 0x258   : > { %v1248_v45 = vpop.eup %1247 }
 0x259   : > { %v619_v54 = vmul.f32 %v1248_v45, %v1246_v10 }
 0x25b   : > { %1113 = vst [vmem:[%s1581_s28 + $0x8] sm:$0xff] %v619_v54  ;;  %692 = vmatmul.mubr.f32.vlgmr.msra.gmra.mxu0 %v619_v54  ;;  %763 = vmatmul.mubr.f32.vlgmr.msra.gmra.mxu1 %v619_v54 }
 0x25c   : > { %805 = vmatpush1.msra.mxu0 %v1586_v2  ;;  %876 = vmatpush1.msra.mxu1 %v1613_v12  ;;  %v2156_v2 = vld [vmem:[#allocation15_spill] sm:$0xff] }
 0x25d   : > { %806 = vmatprep.subr.mxu0 %v1588_v3  ;;  %877 = vmatprep.subr.mxu1 %v1619_v14  ;;  %v2157_v3 = vld [vmem:[#allocation21_spill] sm:$0xff]  ;;  %v2164_v12 = vld [vmem:[#allocation19_spill] sm:$0xff]  ;;  %v2166_v14 = vld [vmem:[#allocation20_spill] sm:$0xff] }
 0x25e   : > { %807 = vmatpush1.msra.mxu0 %v1591_v4  ;;  %878 = vmatpush1.msra.mxu1 %v1621_v15  ;;  %v2158_v4 = vld [vmem:[#allocation16_spill] sm:$0xff]  ;;  %v2167_v15 = vld [vmem:[#allocation29_spill] sm:$0xff] }
 0x25f   : > { %808 = vmatprep.subr.mxu0 %v1595_v6  ;;  %879 = vmatprep.subr.mxu1 %v1627_v17  ;;  %v2159_v6 = vld [vmem:[#allocation23_spill] sm:$0xff]  ;;  %v2169_v17 = vld [vmem:[#allocation30_spill] sm:$0xff] }
 0x260   : > { %809 = vmatpush1.msra.mxu0 %v1599_v7  ;;  %880 = vmatpush1.msra.mxu1 %v1633_v19  ;;  %v2160_v7 = vld [vmem:[#allocation17_spill] sm:$0xff]  ;;  %v2171_v19 = vld [vmem:[#allocation31_spill] sm:$0xff] }
 0x261   : > { %810 = vmatprep.subr.mxu0 %v1602_v8  ;;  %881 = vmatprep.subr.mxu1 %v1635_v20  ;;  %v2161_v8 = vld [vmem:[#allocation25_spill] sm:$0xff]  ;;  %v2172_v20 = vld [vmem:[#allocation26_spill] sm:$0xff] }
 0x262   : > { %811 = vmatpush1.msra.mxu0 %v1605_v9  ;;  %882 = vmatpush1.msra.mxu1 %v1641_v22  ;;  %v2162_v9 = vld [vmem:[#allocation18_spill] sm:$0xff]  ;;  %v2174_v22 = vld [vmem:[#allocation32_spill] sm:$0xff] }
 0x263   : > { %812 = vmatprep.subr.mxu0 %v1610_v11  ;;  %883 = vmatprep.subr.mxu1 %v1647_v24  ;;  %v2163_v11 = vld [vmem:[#allocation27_spill] sm:$0xff] }
 0x264   : > { %813 = vmatpush1.msra.mxu0 %v1616_v13  ;;  %884 = vmatpush1.msra.mxu1 %v1653_v26  ;;  %v2165_v13 = vld [vmem:[#allocation28_spill] sm:$0xff] }
 0x265   : > { %814 = vmatprep.subr.mxu0 %v1624_v16  ;;  %885 = vmatprep.subr.mxu1 %v1659_v28  ;;  %v2168_v16 = vld [vmem:[#allocation22_spill] sm:$0xff] }
 0x266   : > { %815 = vmatpush1.msra.mxu0 %v1630_v18  ;;  %886 = vmatpush1.msra.mxu1 %v1665_v30  ;;  %v2170_v18 = vld [vmem:[#allocation24_spill] sm:$0xff] }
 0x267   : > { %816 = vmatprep.subr.mxu0 %v1638_v21  ;;  %887 = vmatprep.subr.mxu1 %v1671_v32  ;;  %v2173_v21 = vmov 0.0  }
 0x268   : > { %817 = vmatpush1.msra.mxu0 %v1644_v23  ;;  %888 = vmatpush1.msra.mxu1 %v1677_v34  ;;  %v1114_v23 = vld [vmem:[%s1570_s22 + $0x40] sm:$0xff]  ;;  %v1117_v34 = vld [vmem:[%s1570_s22 + $0x58] sm:$0xff] }
 0x269   : > { %818 = vmatprep.subr.mxu0 %v1650_v25  ;;  %889 = vmatprep.subr.mxu1 %v1683_v36  ;;  %v1115_v25 = vld [vmem:[%s1570_s22 + $0x48] sm:$0xff] }
 0x26a   : > { %819 = vmatpush1.msra.mxu0 %v1656_v27  ;;  %890 = vmatpush1.msra.mxu1 %v1689_v38 }
 0x26b   : > { %820 = vmatprep.subr.mxu0 %v1662_v29  ;;  %891 = vmatprep.subr.mxu1 %v1695_v40 }
 0x26c   : > { %821 = vmatpush1.msra.mxu0 %v1668_v31  ;;  %892 = vmatpush1.msra.mxu1 %v1701_v42  ;;  %v1116_v31 = vld [vmem:[%s1570_s22 + $0x50] sm:$0xff] }
 0x26d   : > { %822 = vmatprep.subr.mxu0 %v1674_v33  ;;  %893 = vmatprep.subr.mxu1 %v1707_v44 }
 0x26e   : > { %823 = vmatpush1.msra.mxu0 %v1680_v35  ;;  %894 = vmatpush1.msra.mxu1 %v1713_v46 }
 0x26f   : > { %824 = vmatprep.subr.mxu0 %v1686_v37  ;;  %895 = vmatprep.subr.mxu1 %v1719_v48 }
 0x270   : > { %825 = vmatpush1.msra.mxu0 %v1692_v39  ;;  %896 = vmatpush1.msra.mxu1 %v1725_v50 }
 0x271   : > { %826 = vmatprep.subr.mxu0 %v1698_v41  ;;  %897 = vmatprep.subr.mxu1 %v1731_v52 }
 0x272   : > { %827 = vmatpush1.msra.mxu0 %v2156_v2  ;;  %898 = vmatpush1.msra.mxu1 %v2157_v3 }
 0x273   : > { %828 = vmatprep.subr.mxu0 %v2158_v4  ;;  %899 = vmatprep.subr.mxu1 %v2159_v6 }
 0x274   : > { %829 = vmatpush1.msra.mxu0 %v2160_v7  ;;  %900 = vmatpush1.msra.mxu1 %v2161_v8 }
 0x275   : > { %830 = vmatprep.subr.mxu0 %v2162_v9  ;;  %901 = vmatprep.subr.mxu1 %v2163_v11 }
 0x276   : > { %831 = vmatpush1.msra.mxu0 %v2164_v12  ;;  %902 = vmatpush1.msra.mxu1 %v2165_v13 }
 0x277   : > { %832 = vmatprep.subr.mxu0 %v2166_v14  ;;  %903 = vmatprep.subr.mxu1 %v2167_v15 }
 0x278   : > { %833 = vmatpush1.msra.mxu0 %v2168_v16  ;;  %904 = vmatpush1.msra.mxu1 %v2169_v17 }
 0x279   : > { %834 = vmatprep.subr.mxu0 %v2170_v18  ;;  %905 = vmatprep.subr.mxu1 %v2171_v19 }
 0x27a   : > { %835 = vmatpush1.msra.mxu0 %v2172_v20  ;;  %868 = vmatprep.mubr.f32.mxu0 %v2173_v21 }
 0x27b   : > { %906 = vmatpush1.msra.mxu1 %v2174_v22  ;;  %939 = vmatprep.mubr.f32.mxu1 %v2173_v21 }
 0x31b   : > { %v693_v24 = vpop.f32.mrf.mxu0  ;;  %v764_v32 = vpop.f32.mrf.mxu1 }
 0x31c   : > { %v769_v26 = vadd.f32 %v1114_v23, %v693_v24  ;;  %v771_v33 = vadd.f32 %v1116_v31, %v764_v32 }
 0x31d   : > { %v695_v27 = vpop.f32.mrf.mxu0  ;;  %v766_v35 = vpop.f32.mrf.mxu1 }
 0x31e   : > { %v1118_v28 = vmul.f32 -1.442695, %v769_v26  ;;  %v770_v29 = vadd.f32 %v1115_v25, %v695_v27  ;;  %v1120_v36 = vmul.f32 -1.442695, %v771_v33  ;;  %v772_v38 = vadd.f32 %v1117_v34, %v766_v35 }
 0x320   : > { %1249 = vpow2.f32 %v1118_v28  ;;  %v1119_v30 = vmul.f32 -1.442695, %v770_v29 }
 0x322   : > { %1251 = vpow2.f32 %v1119_v30 }
 0x323   : > { %1253 = vpow2.f32 %v1120_v36 }
 0x32d   : > { %v1250_v37 = vpop.eup %1249 }
 0x32e   : > { %v782_v39 = vadd.f32 1.0, %v1250_v37 }
 0x32f   : > { %v1252_v40 = vpop.eup %1251 }
 0x330   : > { %1255 = vrcp.f32 %v782_v39  ;;  %v783_v41 = vadd.f32 1.0, %v1252_v40  ;;  %v1254_v42 = vpop.eup %1253 }
 0x331   : > { %1257 = vtanh.f32 %v772_v38  ;;  %v784_v48 = vadd.f32 1.0, %v1254_v42 }
 0x332   : > { %1259 = vrcp.f32 %v783_v41 }
 0x333   : > { %1261 = vrcp.f32 %v784_v48 }
 0x33d   : > { %v1256_v43 = vpop.eup %1255 }
 0x33e   : > { %v1258_v44 = vpop.eup %1257 }
 0x33f   : > { %v1260_v46 = vpop.eup %1259  ;;  %v793_v52 = vmul.f32 %v1258_v44, %v1256_v43 }
 0x340   : > { %v792_v50 = vmul.f32 %v1260_v46, %v1925_v5  ;;  %v1262_v55 = vpop.eup %1261  ;;  %v1125_v5 = vld [vmem:[%s1570_s22 + $0x78] sm:$0xff] }
 0x342   : > { %v794_v61 = vadd.f32 %v793_v52, %v792_v50 }
 0x344   : > { %1263 = vtanh.f32 %v794_v61 }
 0x351   : > { %v1264_v49 = vpop.eup %1263 }
 0x352   : > { %v796_v1 = vmul.f32 %v1264_v49, %v1262_v55 }
 0x354   : > { %1121 = vst [vmem:[%s1581_s28 + $0x10] sm:$0xff] %v796_v1  ;;  %869 = vmatmul.mubr.f32.vlgmr.msra.gmra.mxu0 %v796_v1  ;;  %940 = vmatmul.mubr.f32.vlgmr.msra.gmra.mxu1 %v796_v1 }
 0x414   : > { %v870_v51 = vpop.f32.mrf.mxu0  ;;  %v941_v56 = vpop.f32.mrf.mxu1 }
 0x415   : > { %v946_v60 = vadd.f32 %v1122_v47, %v870_v51  ;;  %v948_v58 = vadd.f32 %v1124_v0, %v941_v56 }
 0x416   : > { %v872_v53 = vpop.f32.mrf.mxu0  ;;  %v943_v10 = vpop.f32.mrf.mxu1 }
 0x417   : > { %v1126_v59 = vmul.f32 -1.442695, %v946_v60  ;;  %v947_v57 = vadd.f32 %v1123_v62, %v872_v53  ;;  %v1128_v45 = vmul.f32 -1.442695, %v948_v58  ;;  %v949_v2 = vadd.f32 %v1125_v5, %v943_v10 }
 0x419   : > { %1265 = vpow2.f32 %v1126_v59  ;;  %v1127_v63 = vmul.f32 -1.442695, %v947_v57 }
 0x41b   : > { %1267 = vpow2.f32 %v1127_v63 }
 0x41c   : > { %1269 = vpow2.f32 %v1128_v45 }
 0x426   : > { %v1266_v54 = vpop.eup %1265 }
 0x427   : > { %v959_v3 = vadd.f32 1.0, %v1266_v54 }
 0x428   : > { %v1268_v4 = vpop.eup %1267 }
 0x429   : > { %1271 = vrcp.f32 %v959_v3  ;;  %v960_v6 = vadd.f32 1.0, %v1268_v4  ;;  %v1270_v7 = vpop.eup %1269 }
 0x42a   : > { %1273 = vtanh.f32 %v949_v2  ;;  %v961_v12 = vadd.f32 1.0, %v1270_v7 }
 0x42b   : > { %1275 = vrcp.f32 %v960_v6 }
 0x42c   : > { %1277 = vrcp.f32 %v961_v12 }
 0x436   : > { %v1272_v8 = vpop.eup %1271 }
 0x437   : > { %v1274_v9 = vpop.eup %1273 }
 0x438   : > { %v1276_v11 = vpop.eup %1275  ;;  %v970_v14 = vmul.f32 %v1274_v9, %v1272_v8 }
 0x439   : > { %v969_v13 = vmul.f32 %v1276_v11, %v794_v61  ;;  %v1278_v16 = vpop.eup %1277 }
 0x43b   : > { %v971_v15 = vadd.f32 %v970_v14, %v969_v13 }
 0x43d   : > { %1279 = vtanh.f32 %v971_v15  ;;  %977 = vst [vmem:[#allocation3] sm:$0xff] %v971_v15 }
 0x44a   : > { %v1280_v17 = vpop.eup %1279 }
 0x44b   : > { %v973_v18 = vmul.f32 %v1280_v17, %v1278_v16 }
 0x44d   : > { %1129 = vst [vmem:[%s1581_s28 + $0x18] sm:$0xff] %v973_v18  ;;  %976 = vst [vmem:[#allocation2] sm:$0xff] %v973_v18 }
 0x44e   : > { %1348 = shalt.err (!%p1345_p7)
}
 0x44f   : > { %s1349_s3 = scalar_lea.hbm %s2008_s26, 512  ;;  %s1353_s27 = scalar_lea.hbm %s2061_s2, 1024 }
 0x450   : > { %p1350_p4 = scmp.ne.s32.totalorder %s2008_s26, %s1349_s3  ;;  %p1354_p11 = scmp.lt.s32.totalorder %s2008_s26, %s2061_s2 }
 0x451   : > { %p1355_p10 = scmp.lt.s32.totalorder %s1353_s27, %s1349_s3 }
 0x452   : > { %p1351_p6 = pnand %p1350_p4, %p1535_p13 }
 0x453   : > { %p1356_p8 = por %p1355_p10, %p1354_p11 }
 0x454   : > { %p1352_p9 = pneg %p1351_p6 }
 0x456   : > { %p1357_p1 = pnand %p1356_p8, %p1352_p9 }
 0x458   : > { %1360 = shalt.err (!%p1357_p1)
}
 0x459   : > { %s1428_s21 = smov 128   ;;  %s1429_s28 = smov 8  }
 0x45a   : > { %1144 = dma.vmem_to_hbm [thread:$0]  (%p1535_p13), %s2010_s19, 512, %s2008_s26, %s979_s29, %s1428_s21, %s1428_s21, %s1429_s28  }
 0x45b PF: > { %s1008_s17 = sand.u32 1, %s1399_s9   ;;  %p2175_p12 = scmp.ne.s32.totalorder %s2107_s20, 0 }
 0x45c   : > { %p2176_p0 = scmp.ge.s32.totalorder %s1419_s14, 2  ;;  %s1009_s23 = scalar_lea.sflag [#allocation6], %s1008_s17 }
 0x45e   : > { %p1155_p2 = pnand %p2176_p0, %p2175_p12 }
 0x460   : > { %p1156_p3 = pneg %p1155_p2 }
 0x462   : > { %1394 = dma.done.wait (%p1156_p3), %s1009_s23, 512  }
 0x463   : > { %1396 = vsyncadd (%p1156_p3), %s1009_s23, 4294966784  ;;  %s19_s14 = sadd.s32 1, %s1419_s14   ;;  %s2177_s9 = smov %s1403_s10 }
 0x464   : > { %p16_p5 = scmp.ge.s32.totalorder %s19_s14, 4   ;;  %s2178_s10 = smov %s1407_s11 }
 0x465   : > { %s2179_s11 = smov %s1544_s15  ;;  %s2180_s12 = smov %s1415_s13 }
 0x466   : > { %s2181_s13 = smov %s2183_s25  ;;  %18 = sbr.rel (!%p16_p5) target bundleno = 7 (0x7), region = 87 }
 0x46b   :  { %1014 = vsyncpa [#allocation5], 1 }
 0x46c   :  { %1016 = vsyncpa [#allocation5 + $0x1], 1 }
 0x46d   :  { %1017 = vsyncpa [#allocation8], 1 }
 0x46e   :  { %1018 = vsyncpa [#allocation6], 1 }
 0x46f   :  { %1020 = vsyncpa [#allocation6 + $0x1], 1 }

</bundles_post_ra>
